<compile_context>
chip_gen: v6e
topology: v6e:2x2x1
jax: 0.10.0
libtpu: 0.0.40
codegen_flags: <defaults>
</compile_context>

<pallas_src>
import functools

import jax
import jax.numpy as jnp
from jax.experimental import pallas as pl
from jax.experimental.pallas import tpu as pltpu

_LANE = 128
_MAX_TM = 2048                     # upper bound on rows per grid step
_TILE_BYTES_BUDGET = 20 << 20      # double-buffered streaming (in+out) tiles
_WEIGHT_BYTES_BUDGET = 12 << 20    # double-buffered weight/bias tiles per N step

try:  # generation-aware VMEM cap (v7x: 64 MiB physical, v5e/v6e: 128 MiB)
    _VMEM_CAPACITY = int(pltpu.get_tpu_info().vmem_capacity_bytes)
except Exception:  # pragma: no cover - conservative fallback
    _VMEM_CAPACITY = 128 << 20


def _round_up(n: int, m: int) -> int:
    return ((n + m - 1) // m) * m


def _sublane(dtype) -> int:
    # f32 -> 8, bf16 -> 16 packed rows per sublane group.
    return max(8, 32 // jnp.dtype(dtype).itemsize)


# ----------------------------------------------------------------------------
# Kernels
# ----------------------------------------------------------------------------
def _cell_kernel_xh(x_ref, h_ref, w_ref, u_ref, b_ref, out_ref):
    # x_ref: (TM, Ip), h_ref: (TM, Hin), w_ref: (Ip, TN), u_ref: (Hin, TN),
    # b_ref: (1, TN) f32, out_ref: (TM, TN)
    acc = jnp.dot(x_ref[...], w_ref[...], preferred_element_type=jnp.float32)
    acc = acc + jnp.dot(h_ref[...], u_ref[...], preferred_element_type=jnp.float32)
    out_ref[...] = jnp.tanh(acc + b_ref[...]).astype(out_ref.dtype)


def _cell_kernel_x(x_ref, w_ref, b_ref, out_ref):
    # state=None: zero initial hidden state => h @ U == 0, skip it entirely.
    acc = jnp.dot(x_ref[...], w_ref[...], preferred_element_type=jnp.float32)
    out_ref[...] = jnp.tanh(acc + b_ref[...]).astype(out_ref.dtype)


# ----------------------------------------------------------------------------
# Tiled pallas_call launcher
# ----------------------------------------------------------------------------
def _run_cell(x2, h2, w, u, b_row, out_dtype):
    """x2:(M,Ip), h2:(M,Hin)|None, w:(Ip,Hp), u:(Hin,Hp)|None, b_row:(1,Hp) f32."""
    m, ip = x2.shape
    hp = w.shape[1]
    hin = 0 if h2 is None else h2.shape[1]

    in_bytes = jnp.dtype(x2.dtype).itemsize
    w_bytes = jnp.dtype(w.dtype).itemsize
    out_bytes = jnp.dtype(out_dtype).itemsize

    # --- N (output-lane) tiling: largest 128-multiple divisor of Hp whose
    #     double-buffered weight+bias tiles fit the weight budget.
    groups = hp // _LANE
    tn = hp
    for d in range(1, groups + 1):
        if groups % d:
            continue
        cand = (groups // d) * _LANE
        if (2 * (ip + hin) * cand * w_bytes + 2 * cand * 4 <= _WEIGHT_BYTES_BUDGET
                or cand == _LANE):
            tn = cand
            break

    # --- M (row) tiling: big tiles, but keep >=2 grid steps when M allows
    #     (v7x megacore sharding) and keep streaming tiles inside budget.
    m8 = _round_up(m, 8)
    tm = max(8, min(_MAX_TM, _round_up(pl.cdiv(m8, 2), 8)))

    def _tile_bytes(t):
        return 2 * t * (ip + hin) * in_bytes + 2 * t * tn * out_bytes

    while tm > 8 and _tile_bytes(tm) > _TILE_BYTES_BUDGET:
        tm = _round_up(tm // 2, 8)
    m_pad = _round_up(m, tm)

    # Pad rows only if actually needed.
    if m_pad != m:
        x2 = jnp.pad(x2, ((0, m_pad - m), (0, 0)))
        if h2 is not None:
            h2 = jnp.pad(h2, ((0, m_pad - m), (0, 0)))

    # --- VMEM limit: true footprint (weights/bias are double-buffered too even
    #     with a constant index_map), generation-aware cap.
    weight_tile_bytes = 2 * (ip + hin) * tn * w_bytes + 2 * tn * 4
    footprint = _tile_bytes(tm) + weight_tile_bytes
    cap = (36 << 20) if _VMEM_CAPACITY <= (64 << 20) else (64 << 20)
    vmem_limit = int(min(max(footprint + footprint // 2 + (4 << 20), 16 << 20), cap))

    grid = (m_pad // tm, hp // tn)

    flops = 2 * m_pad * (ip + hin) * hp
    bytes_accessed = (m_pad * (ip + hin) * in_bytes
                      + (ip + hin) * hp * w_bytes + hp * 4
                      + m_pad * hp * out_bytes)
    cost = pl.CostEstimate(flops=flops, transcendentals=m_pad * hp,
                           bytes_accessed=bytes_accessed)

    if h2 is None:
        kernel = _cell_kernel_x
        in_specs = [
            pl.BlockSpec((tm, ip), lambda i, j: (i, 0)),   # x rows
            pl.BlockSpec((ip, tn), lambda i, j: (0, j)),   # W column block
            pl.BlockSpec((1, tn), lambda i, j: (0, j)),    # bias block
        ]
        args = (x2, w, b_row)
    else:
        kernel = _cell_kernel_xh
        in_specs = [
            pl.BlockSpec((tm, ip), lambda i, j: (i, 0)),   # x rows
            pl.BlockSpec((tm, hin), lambda i, j: (i, 0)),  # h rows
            pl.BlockSpec((ip, tn), lambda i, j: (0, j)),   # W column block
            pl.BlockSpec((hin, tn), lambda i, j: (0, j)),  # U column block
            pl.BlockSpec((1, tn), lambda i, j: (0, j)),    # bias block
        ]
        args = (x2, h2, w, u, b_row)

    out = pl.pallas_call(
        kernel,
        out_shape=jax.ShapeDtypeStruct((m_pad, hp), out_dtype),
        grid=grid,
        in_specs=in_specs,
        out_specs=pl.BlockSpec((tm, tn), lambda i, j: (i, j)),
        compiler_params=pltpu.CompilerParams(
            dimension_semantics=("parallel", "parallel"),
            vmem_limit_bytes=vmem_limit,
        ),
        cost_estimate=cost,
    )(*args)
    return out, m_pad


# ----------------------------------------------------------------------------
# Public wrapper (mirrors GraphRNNCell.forward)
# ----------------------------------------------------------------------------
@functools.partial(jax.jit, static_argnames=("feature_last", "compute_dtype"))
def graph_rnn_cell(x, w, u, b, state=None, *, feature_last=True,
                   compute_dtype="bfloat16"):
    """Pallas implementation of GraphRNNCell.forward.

    Args:
      x: (B, nodes, input_size) or (nodes, input_size); if feature_last=False the
         last two axes are swapped here (as in the PyTorch module).
      w: (input_size, hidden_size)
      u: (hidden_size, hidden_size)
      b: (hidden_size,)
      state: optional tuple (h,) with h of shape (B, nodes, hidden_size)
             (or (nodes, hidden_size) for unbatched x).
      compute_dtype: "bfloat16" (default, halves HBM streaming traffic; f32
             accumulation + f32 tanh kept) or "float32" for exact parity.

    Returns:
      tuple (h_new,) matching the PyTorch return convention.
    """
    if not feature_last:
        x = jnp.swapaxes(x, -1, -2)

    is_batched = x.ndim == 3
    if not is_batched:
        x = x[None]

    cdt = jnp.dtype(compute_dtype)
    sub = _sublane(cdt)

    batch, nodes, input_size = x.shape
    hidden_size = w.shape[1]
    hp = _round_up(hidden_size, _LANE)     # output lanes (lane-dense stores)
    ip = _round_up(input_size, sub)        # x contraction dim, sublane-dense
    hin = _round_up(hidden_size, sub)      # h contraction dim, sublane-dense
    m = batch * nodes
    out_dtype = x.dtype

    # Streamed operands / weights in compute dtype (zero-padded dims contribute 0).
    x2 = x.reshape(m, input_size).astype(cdt)
    if ip != input_size:
        x2 = jnp.pad(x2, ((0, 0), (0, ip - input_size)))
    w_p = w.astype(cdt)
    if ip != input_size or hp != hidden_size:
        w_p = jnp.pad(w_p, ((0, ip - input_size), (0, hp - hidden_size)))
    b_row = b.astype(jnp.float32)
    if hp != hidden_size:
        b_row = jnp.pad(b_row, (0, hp - hidden_size))
    b_row = b_row.reshape(1, hp)

    if state is None:
        h2, u_p = None, None
    else:
        h = state[0] if is_batched else state[0][None]
        h2 = h.reshape(m, hidden_size).astype(cdt)
        if hin != hidden_size:
            h2 = jnp.pad(h2, ((0, 0), (0, hin - hidden_size)))
        u_p = u.astype(cdt)
        if hin != hidden_size or hp != hidden_size:
            u_p = jnp.pad(u_p, ((0, hin - hidden_size), (0, hp - hidden_size)))

    out, m_pad = _run_cell(x2, h2, w_p, u_p, b_row, out_dtype)

    # Slice padding away only when padding was actually emitted.
    if m_pad != m or hp != hidden_size:
        out = out[:m, :hidden_size]
    h_new = out.reshape(batch, nodes, hidden_size)
    if not is_batched:
        h_new = jnp.squeeze(h_new, 0)
    return (h_new,)


if __name__ == "__main__":
    # Small shapes consistent with the module.
    batch = 2
    nodes = 8
    input_size = 16
    hidden_size = 32
    dtype = jnp.float32

    key = jax.random.PRNGKey(0)
    kx, kh, kw, ku, kb = jax.random.split(key, 5)

    x = jax.random.normal(kx, (batch, nodes, input_size), dtype=dtype)
    h0 = jax.random.normal(kh, (batch, nodes, hidden_size), dtype=dtype)

    # Deterministic parameter init (Weight / Weight / Bias shapes from __init__).
    w = jax.random.normal(kw, (input_size, hidden_size), dtype=dtype) * 0.1
    u = jax.random.normal(ku, (hidden_size, hidden_size), dtype=dtype) * 0.1
    b = jax.random.normal(kb, (hidden_size,), dtype=dtype) * 0.1

    # Pure-JAX references.
    ref1 = jnp.tanh(jnp.einsum("bmi,ih->bmh", x, w) + b)
    ref2 = jnp.tanh(
        jnp.einsum("bmi,ih->bmh", x, w) + jnp.einsum("bmh,hk->bmk", h0, u) + b
    )

    # Case 1: f32 compute path, exact parity (state=None and with state).
    (h_f32_a,) = graph_rnn_cell(x, w, u, b, state=None, compute_dtype="float32")
    (h_f32_b,) = graph_rnn_cell(x, w, u, b, state=(h0,), compute_dtype="float32")
    jax.block_until_ready((h_f32_a, h_f32_b))
    assert jnp.allclose(h_f32_a, ref1, atol=1e-5, rtol=1e-5)
    assert jnp.allclose(h_f32_b, ref2, atol=1e-5, rtol=1e-5)
    assert h_f32_b.shape == (batch, nodes, hidden_size)

    # Case 2: default bf16 streaming path (f32 accumulation), relaxed tolerance.
    (h_bf_a,) = graph_rnn_cell(x, w, u, b, state=None)
    (h_bf_b,) = graph_rnn_cell(x, w, u, b, state=(h0,))
    jax.block_until_ready((h_bf_a, h_bf_b))
    assert jnp.allclose(h_bf_a, ref1, atol=2e-2, rtol=2e-2)
    assert jnp.allclose(h_bf_b, ref2, atol=2e-2, rtol=2e-2)

    # Case 3: unbatched (2-D) input.
    (h_un,) = graph_rnn_cell(x[0], w, u, b, state=(h0[0],), compute_dtype="float32")
    h_un = jax.block_until_ready(h_un)
    assert jnp.allclose(h_un, ref2[0], atol=1e-5, rtol=1e-5)

    # Case 4: larger node count exercising the multi-tile row grid
    # (M = 1200 -> two row tiles of 600, second grid axis of 1).
    nodes_big = 600
    xb = jax.random.normal(kx, (batch, nodes_big, input_size), dtype=dtype)
    hb = jax.random.normal(kh, (batch, nodes_big, hidden_size), dtype=dtype)
    (h_big,) = graph_rnn_cell(xb, w, u, b, state=(hb,), compute_dtype="float32")
    h_big = jax.block_until_ready(h_big)
    ref_big = jnp.tanh(
        jnp.einsum("bmi,ih->bmh", xb, w) + jnp.einsum("bmh,hk->bmk", hb, u) + b
    )
    assert jnp.allclose(h_big, ref_big, atol=1e-5, rtol=1e-5)

    print("KERNEL_OK")
</pallas_src>

<mosaic_0001>
module attributes {stable_mosaic.version = 11 : i64} {
  func.func @_cell_kernel_x(%arg0: i32, %arg1: i32, %arg2: memref<8x16xf32, #tpu.memory_space<vmem>>, %arg3: memref<16x128xf32, #tpu.memory_space<vmem>>, %arg4: memref<1x128xf32, #tpu.memory_space<vmem>>, %arg5: memref<8x128xf32, #tpu.memory_space<vmem>>) attributes {dimension_semantics = [#tpu.dimension_semantics<parallel>, #tpu.dimension_semantics<parallel>], iteration_bounds = array<i64: 2, 1>, scalar_prefetch = 0 : i64, scratch_operands = 0 : i64, tpu.core_type = #tpu.core_type<tc>, window_params = [{transform_indices = @transform_0, window_bounds = array<i64: 8, 16>}, {transform_indices = @transform_1, window_bounds = array<i64: 16, 128>}, {transform_indices = @transform_2, window_bounds = array<i64: 1, 128>}, {transform_indices = @transform_3, window_bounds = array<i64: 8, 128>}]} {
    %c0 = arith.constant 0 : index
    %c0_0 = arith.constant 0 : index
    %0 = vector.load %arg2[%c0, %c0_0] : memref<8x16xf32, #tpu.memory_space<vmem>>, vector<8x16xf32>
    %c0_1 = arith.constant 0 : index
    %c0_2 = arith.constant 0 : index
    %1 = vector.load %arg3[%c0_1, %c0_2] : memref<16x128xf32, #tpu.memory_space<vmem>>, vector<16x128xf32>
    %cst = arith.constant dense<0.000000e+00> : vector<8x128xf32>
    %2 = tpu.matmul %0, %1, %cst {dimension_numbers = #tpu.dot_dimension_numbers<[1], [0], [0], [1], [0, 0, 1, 1], [], []>} : vector<8x16xf32>, vector<16x128xf32>, vector<8x128xf32> -> vector<8x128xf32>
    %c0_3 = arith.constant 0 : index
    %c0_4 = arith.constant 0 : index
    %3 = vector.load %arg4[%c0_3, %c0_4] : memref<1x128xf32, #tpu.memory_space<vmem>>, vector<1x128xf32>
    %4 = vector.broadcast %3 : vector<1x128xf32> to vector<8x128xf32>
    %5 = arith.addf %2, %4 : vector<8x128xf32>
    %6 = math.tanh %5 : vector<8x128xf32>
    %c0_5 = arith.constant 0 : index
    %c0_6 = arith.constant 0 : index
    %7 = vector.load %arg5[%c0_5, %c0_6] : memref<8x128xf32, #tpu.memory_space<vmem>>, vector<8x128xf32>
    tpu.vector_store %arg5[%c0_5, %c0_6], %6 {strides = array<i32>} : memref<8x128xf32, #tpu.memory_space<vmem>>, vector<8x128xf32>,
    return
  }
  func.func @transform_0(%arg0: i32, %arg1: i32) -> (i32, i32) {
    %c0_i32 = arith.constant 0 : i32
    %c0_i32_0 = arith.constant 0 : i32
    return %arg0, %c0_i32 : i32, i32
  }
  func.func @transform_1(%arg0: i32, %arg1: i32) -> (i32, i32) {
    %c0_i32 = arith.constant 0 : i32
    %c0_i32_0 = arith.constant 0 : i32
    return %c0_i32, %arg1 : i32, i32
  }
  func.func @transform_2(%arg0: i32, %arg1: i32) -> (i32, i32) {
    %c0_i32 = arith.constant 0 : i32
    %c0_i32_0 = arith.constant 0 : i32
    return %c0_i32, %arg1 : i32, i32
  }
  func.func @transform_3(%arg0: i32, %arg1: i32) -> (i32, i32) {
    %c0_i32 = arith.constant 0 : i32
    return %arg0, %arg1 : i32, i32
  }
}

</mosaic_0001>

<bundles_post_ra>
// kernel: graph_rnn_cell.1
= control target key start
LH: loop header
LB: loop body
LE: loop exit
PB: predicated region body
PF: predicated region fallthrough
CT: control target
= control target key end

     0   :  { %s499_s12 = smov 0   ;;  %s501_s13 = smov 0   ;;  %s541_s0 = inlined_call_operand.vmem [shape: f32[16,16], index: 0, kind: input, shape index: {}]   ;;  %s542_s1 = inlined_call_operand.vmem [shape: f32[16,128], index: 1, kind: input, shape index: {}]   ;;  %s543_s2 = inlined_call_operand.vmem [shape: f32[1,128], index: 2, kind: input, shape index: {}]   ;;  %s544_s3 = inlined_call_operand.vmem [shape: f32[16,128], index: 3, kind: output, shape index: {}]  }
   0x1   :  { %s503_s14 = smov 0  }
   0x2 LB: > { %s25_s15 = sadd.s32 1, %s471_s13  ;;  %p408_p0 = scmp.ge.s32.totalorder %s475_s14, 1  ;;  %s475_s14 = sphi %s503_s14, %s13_s14   ;;  %s471_s13 = sphi %s501_s13, %s546_s13   ;;  %s467_s12 = sphi %s499_s12, %s545_s12  }
   0x3   : > { %p27_p1 = scmp.ge.s32.totalorder %s25_s15, 2  ;;  %p167_p2 = scmp.lt.s32.totalorder %s475_s14, 3 }
   0x5   : > { %s548_s15 = smov (%p27_p1, %s25_s15), 0  ;;  %p168_p3 = pnand %p408_p0, %p167_p2 }
   0x6   : > { %p199_p4 = scmp.lt.s32.totalorder (!%p168_p3), %s467_s12, 1 }
   0x7   : > { %171 = sbr.rel (%p168_p3) target bundleno = 227 (0xe3), region = 32 }
   0xc   : > { %v219_v0 = vld [vmem:[%s542_s1 + $0x8] sm:$0xff]  ;;  %v477_v1 = vmov 0.0   ;;  %v218_v2 = vld [vmem:[%s542_s1] sm:$0xff]  ;;  %vm478_vm0 = vmmov 0   ;;  %s550_s12 = smov (!%p199_p4, %s467_s12), 1  ;;  %vm227_vm1 = vcmask 130048  }
   0xd   : > { %418 = vmatprep.subr.mxu0 %v477_v1  ;;  %422 = vmatprep.mubr.msk.f32.mxu0 %vm478_vm0, %v477_v1  ;;  %s409_s20 = sshll.u32 %s550_s12, 3  ;;  %v411_v4 = vld [vmem:[%s543_s2] ss:$0 sm:$0xff] }
   0xe   : > { %419 = vmatpush3.msra.mxu0 %v219_v0  ;;  %s202_s23 = scalar_lea.vmem %s541_s0, %s409_s20  ;;  %s216_s28 = scalar_lea.vmem %s544_s3, %s409_s20 }
   0xf   : > { %420 = vmatprep.subr.mxu0 %v477_v1  ;;  %v217_v3 = vld [vmem:[%s202_s23] sm:$0xff] }
  0x10   : > { %421 = vmatpush3.msra.mxu0 %v218_v2 }
  0x11   : > { %423 = vmatmul.mubr.msk.f32.vlgmr.msra.gmra.mxu0 %vm227_vm1, %v217_v3 }
  0xd1   : > { %v297_v5 = vpop.f32.mrf.mxu0 }
  0xd2   : > { %v298_v6 = vadd.f32 %v411_v4, %v297_v5 }
  0xd3   : > { %v424_v7 = vpop.f32.mrf.mxu0 }
  0xd4   : > { %451 = vtanh.f32 %v298_v6 }
  0xe1   : > { %v452_v8 = vpop.eup %451 }
  0xe2   : > { %302 = vst [vmem:[%s216_s28] sm:$0xff] %v452_v8 }
  0xe3 PF: > { %s13_s14 = sadd.s32 1, %s475_s14   ;;  %s545_s12 = smov %s471_s13 }
  0xe4   : > { %p10_p5 = scmp.ge.s32.totalorder %s13_s14, 4   ;;  %s546_s13 = smov %s548_s15 }
  0xe6   :  { %12 = sbr.rel (!%p10_p5) target bundleno = 2 (0x2), region = 68 }

</bundles_post_ra>
